<compile_context>
chip_gen: v7x
topology: tpu7x:2x2x1
jax: 0.10.0
libtpu: 0.0.40
codegen_flags: <defaults>
</compile_context>

<pallas_src>
import math
import functools

import jax
import jax.numpy as jnp
from jax import lax
from jax.experimental import pallas as pl
from jax.experimental.pallas import tpu as pltpu


_MXU_DTYPE = jnp.bfloat16     # MXU operand dtype; accumulation stays f32
_NEG_INF = -1e9
_LN_EPS = 1e-5


def _mxu(x):
    return x.astype(_MXU_DTYPE)


# --------------------------- tile-size helpers ------------------------------

def _pick_tile(n, target, align):
    """Largest multiple-of-`align` divisor of n that is <= target (else n itself)."""
    if n <= target:
        return n
    t = (target // align) * align
    while t >= align:
        if n % t == 0:
            return t
        t -= align
    return n


def _row_tile(m, target=512):
    """Row (sublane) tile: largest multiple-of-8 divisor <= target.
    Single big tile keeps mem-bound kernels near HBM roofline on 1-TC v5e/v6e.
    TODO(synk): on v7x (2 TensorCores) prefer >=2 grid steps so both cores get work."""
    return _pick_tile(m, target, 8)


def _vmem_limit(estimated_bytes):
    """Explicit scoped-VMEM limit (defaults are only 16 MiB v5e / 32 MiB v6e,v7x)."""
    return int(min(max(estimated_bytes, 32 * 1024 * 1024), 64 * 1024 * 1024))


# ----------------------------- Pallas kernels ------------------------------

def _mha_ln_kernel(*refs, n_heads, causal, self_attn):
    """Fused: q/kv projections -> multi-head attention -> single K=D output projection ->
    residual add -> post-LayerNorm, for one (batch, query-tile) grid step."""
    if self_attn:
        (xq_ref, pad_ref, wq_ref, bq_ref, wkv_ref, bkv_ref,
         wo_ref, bo_ref, g_ref, b_ref, o_ref) = refs
        xkv_ref = xq_ref                      # same ref reused: x DMA'd once
    else:
        (xq_ref, xkv_ref, pad_ref, wq_ref, bq_ref, wkv_ref, bkv_ref,
         wo_ref, bo_ref, g_ref, b_ref, o_ref) = refs

    xq = xq_ref[0]                            # (tq, D) f32
    xkv = xkv_ref[0]                          # (Tk, D) f32
    pad = pad_ref[0]                          # (1, Tk) additive mask (0 / -1e9)
    tq, D = xq.shape
    Tk = xkv.shape[0]
    dk = D // n_heads

    # Fused projections; weights are pre-cast bf16, 1/sqrt(dk) already folded into wq/bq.
    q = jnp.dot(_mxu(xq), wq_ref[...], preferred_element_type=jnp.float32) + bq_ref[...]
    kv = jnp.dot(_mxu(xkv), wkv_ref[...], preferred_element_type=jnp.float32) + bkv_ref[...]

    # Single additive mask built once (padding + causal); head loop only adds it.
    if causal:
        q0 = pl.program_id(1) * tq            # global query offset of this tile
        row = q0 + lax.broadcasted_iota(jnp.int32, (tq, Tk), 0)
        col = lax.broadcasted_iota(jnp.int32, (tq, Tk), 1)
        mask = pad + jnp.where(row >= col, 0.0, _NEG_INF)
    else:
        mask = pad

    # Per-head attention; contexts collected and projected with ONE K=D matmul.
    # TODO(synk): flash-style Tk streaming + lax.fori_loop over heads for large T/H.
    ctx_heads = []
    for h in range(n_heads):
        qh = q[:, h * dk:(h + 1) * dk]
        kh = kv[:, h * dk:(h + 1) * dk]
        vh = kv[:, D + h * dk:D + (h + 1) * dk]
        s = lax.dot_general(_mxu(qh), _mxu(kh), (((1,), (1,)), ((), ())),
                            preferred_element_type=jnp.float32)       # (tq, Tk)
        s = s + mask
        s = s - jnp.max(s, axis=-1, keepdims=True)
        p = jnp.exp(s)
        p = p * pl.reciprocal(jnp.sum(p, axis=-1, keepdims=True), approx=True)
        ctx_heads.append(jnp.dot(_mxu(p), _mxu(vh), preferred_element_type=jnp.float32))

    ctx = jnp.concatenate(ctx_heads, axis=-1)                          # (tq, D)
    out = jnp.dot(_mxu(ctx), wo_ref[...], preferred_element_type=jnp.float32)

    # Fused residual + post-LayerNorm (stats in f32).
    z = xq + out + bo_ref[...]
    mu = jnp.mean(z, axis=-1, keepdims=True)
    var = jnp.mean(jnp.square(z - mu), axis=-1, keepdims=True)
    o_ref[0] = (z - mu) * lax.rsqrt(var + _LN_EPS) * g_ref[...] + b_ref[...]


def _mlp_ln_kernel(x_ref, w1_ref, b1_ref, w2_ref, b2_ref, g_ref, b_ref, o_ref, acc_ref):
    """Fused MLP with F-chunk reduction axis: relu(x@W1_j + b1_j) @ W2_j accumulated in
    f32 VMEM scratch; residual + post-LayerNorm on the last F chunk."""
    j = pl.program_id(1)

    @pl.when(j == 0)
    def _():
        acc_ref[...] = jnp.zeros_like(acc_ref)

    x = x_ref[...]                                                     # (tm, D) f32
    h = jnp.dot(_mxu(x), w1_ref[...], preferred_element_type=jnp.float32) + b1_ref[...]
    h = jnp.maximum(h, 0.0)
    acc_ref[...] += jnp.dot(_mxu(h), w2_ref[...], preferred_element_type=jnp.float32)

    @pl.when(j == pl.num_programs(1) - 1)
    def _():
        z = x + acc_ref[...] + b2_ref[...]
        mu = jnp.mean(z, axis=-1, keepdims=True)
        var = jnp.mean(jnp.square(z - mu), axis=-1, keepdims=True)
        o_ref[...] = (z - mu) * lax.rsqrt(var + _LN_EPS) * g_ref[...] + b_ref[...]


def _proj_kernel(x_ref, w_ref, o_ref):
    """Bias-free linear tile (vocab projection); weight is bf16."""
    o_ref[...] = jnp.dot(_mxu(x_ref[...]), w_ref[...],
                         preferred_element_type=jnp.float32)


# ------------------------------ kernel wrappers ------------------------------

def mha_add_ln(x_q, x_kv, p, pad_add, gamma, beta, n_heads, causal, self_attn):
    """LayerNorm(x_q + MHA(x_q, x_kv)) as one pallas_call, grid over (batch, q-tiles)."""
    B, Tq, D = x_q.shape
    Tk = x_kv.shape[1]
    tq = _pick_tile(Tq, 256, 8)
    dedupe = self_attn and (tq == Tq)   # q-tiling needs full-length kv as separate input
    kernel = functools.partial(_mha_ln_kernel, n_heads=n_heads, causal=causal,
                               self_attn=dedupe)

    full = lambda b, i: (0, 0)
    q_spec = pl.BlockSpec((1, tq, D), lambda b, i: (b, i, 0))
    kv_spec = pl.BlockSpec((1, Tk, D), lambda b, i: (b, 0, 0))
    pad_spec = pl.BlockSpec((1, 1, Tk), lambda b, i: (b, 0, 0))
    w_specs = [pl.BlockSpec((D, D), full),        # wq  (bf16)
               pl.BlockSpec((1, D), full),        # bq
               pl.BlockSpec((D, 2 * D), full),    # wkv (bf16)
               pl.BlockSpec((1, 2 * D), full),    # bkv
               pl.BlockSpec((D, D), full),        # wo  (bf16)
               pl.BlockSpec((1, D), full),        # bo
               pl.BlockSpec((1, D), full),        # gamma
               pl.BlockSpec((1, D), full)]        # beta
    w_args = (p["wq"], p["bq"], p["wkv"], p["bkv"], p["wo"], p["bo"], gamma, beta)

    if dedupe:
        in_specs = [q_spec, pad_spec] + w_specs
        args = (x_q, pad_add) + w_args
    else:
        in_specs = [q_spec, kv_spec, pad_spec] + w_specs
        args = (x_q, x_kv, pad_add) + w_args

    # Scoped-VMEM estimate: double-buffered blocks + in-kernel intermediates + headroom.
    w_bytes = 2 * (4 * D * D) + 4 * (6 * D)
    io_bytes = 4 * (tq * D + (0 if dedupe else Tk * D) + Tk + tq * D)
    interm = 4 * (tq * D + Tk * 2 * D + 2 * tq * Tk + 2 * tq * D)
    vmem = _vmem_limit(2 * (w_bytes + io_bytes) + interm + (2 << 20))

    return pl.pallas_call(
        kernel,
        out_shape=jax.ShapeDtypeStruct((B, Tq, D), jnp.float32),
        grid=(B, Tq // tq),
        in_specs=in_specs,
        out_specs=pl.BlockSpec((1, tq, D), lambda b, i: (b, i, 0)),
        compiler_params=pltpu.CompilerParams(
            dimension_semantics=("parallel", "parallel"),
            vmem_limit_bytes=vmem),
    )(*args)


def mlp_add_ln(x, w1, b1, w2, b2, gamma, beta):
    """LayerNorm(x + MLP(x)) as one pallas_call; row tiles x F-chunk reduction."""
    B, T, D = x.shape
    M = B * T
    F = w1.shape[1]
    tm = _row_tile(M)
    tf = _pick_tile(F, 2048, 128)

    w_bytes = 2 * (D * tf + tf * D) + 4 * (tf + 3 * D)
    io_bytes = 4 * (2 * tm * D)
    interm = 4 * (tm * tf + tm * D)
    vmem = _vmem_limit(2 * (w_bytes + io_bytes) + interm + 4 * tm * D + (2 << 20))

    out = pl.pallas_call(
        _mlp_ln_kernel,
        out_shape=jax.ShapeDtypeStruct((M, D), jnp.float32),
        grid=(M // tm, F // tf),
        in_specs=[pl.BlockSpec((tm, D), lambda i, j: (i, 0)),
                  pl.BlockSpec((D, tf), lambda i, j: (0, j)),
                  pl.BlockSpec((1, tf), lambda i, j: (0, j)),
                  pl.BlockSpec((tf, D), lambda i, j: (j, 0)),
                  pl.BlockSpec((1, D), lambda i, j: (0, 0)),
                  pl.BlockSpec((1, D), lambda i, j: (0, 0)),
                  pl.BlockSpec((1, D), lambda i, j: (0, 0))],
        out_specs=pl.BlockSpec((tm, D), lambda i, j: (i, 0)),
        scratch_shapes=[pltpu.VMEM((tm, D), jnp.float32)],
        compiler_params=pltpu.CompilerParams(
            dimension_semantics=("parallel", "arbitrary"),
            vmem_limit_bytes=vmem),
    )(x.reshape(M, D), w1, b1, w2, b2, gamma, beta)
    return out.reshape(B, T, D)


def vocab_proj(x2d, w):
    """Bias-free, (M, N)-tiled linear for the vocab projection (bf16 weight)."""
    M, D = x2d.shape
    V = w.shape[1]
    tm = _row_tile(M)
    tn = _pick_tile(V, 512, 128)
    vmem = _vmem_limit(2 * (4 * tm * D + 2 * D * tn + 4 * tm * tn) + (2 << 20))
    # TODO(synk): add a K grid axis + f32 VMEM accumulator for very large d_model.
    return pl.pallas_call(
        _proj_kernel,
        out_shape=jax.ShapeDtypeStruct((M, V), jnp.float32),
        grid=(M // tm, V // tn),
        in_specs=[pl.BlockSpec((tm, D), lambda i, j: (i, 0)),
                  pl.BlockSpec((D, tn), lambda i, j: (0, j))],
        out_specs=pl.BlockSpec((tm, tn), lambda i, j: (i, j)),
        compiler_params=pltpu.CompilerParams(
            dimension_semantics=("parallel", "parallel"),
            vmem_limit_bytes=vmem),
    )(x2d, w)


# ------------------------------ model glue ---------------------------------

def sinusoidal_pe(T, D):
    pos = jnp.arange(T, dtype=jnp.float32)[:, None]
    idx = jnp.arange(0, D, 2, dtype=jnp.float32)
    div = jnp.exp(-math.log(10000.0) * idx / D)
    pe = jnp.zeros((T, D), jnp.float32)
    pe = pe.at[:, 0::2].set(jnp.sin(pos * div))
    pe = pe.at[:, 1::2].set(jnp.cos(pos * div))
    return pe


def transformer_forward(params, src, tgt, src_mask=None):
    D = params["d_model"]
    H = params["n_heads"]
    B, Ts = src.shape
    Tt = tgt.shape[1]

    # Padding mask as a tiny additive vector (B, 1, T_src); causal mask is in-kernel.
    if src_mask is None:
        pad_src = jnp.zeros((B, 1, Ts), jnp.float32)
    else:
        pad_src = jnp.where(src_mask, 0.0, _NEG_INF).astype(jnp.float32)[:, None, :]
    pad_none_tgt = jnp.zeros((B, 1, Tt), jnp.float32)

    # Embeddings (token gather + PE stay as XLA glue; dropout = 0).
    z = jnp.take(params["src_emb"], src, axis=0) * math.sqrt(D) + sinusoidal_pe(Ts, D)[None]
    z = z.astype(jnp.float32)

    # Encoder stack.
    for lp in params["enc_layers"]:
        z = mha_add_ln(z, z, lp["attn"], pad_src, lp["ln1_g"], lp["ln1_b"], H,
                       causal=False, self_attn=True)
        z = mlp_add_ln(z, lp["w1"], lp["b1"], lp["w2"], lp["b2"], lp["ln2_g"], lp["ln2_b"])
    mem = z

    # Decoder stack (teacher forcing, causal self-attention).
    y = jnp.take(params["tgt_emb"], tgt, axis=0) * math.sqrt(D) + sinusoidal_pe(Tt, D)[None]
    y = y.astype(jnp.float32)
    for lp in params["dec_layers"]:
        y = mha_add_ln(y, y, lp["self_attn"], pad_none_tgt,
                       lp["ln1_g"], lp["ln1_b"], H, causal=True, self_attn=True)
        y = mha_add_ln(y, mem, lp["cross_attn"], pad_src,
                       lp["ln2_g"], lp["ln2_b"], H, causal=False, self_attn=False)
        y = mlp_add_ln(y, lp["w1"], lp["b1"], lp["w2"], lp["b2"], lp["ln3_g"], lp["ln3_b"])

    # Final vocab projection (bias-free).
    V = params["tgt_vocab"]
    logits = vocab_proj(y.reshape(B * Tt, D), params["w_vocab"])
    return logits.reshape(B, Tt, V)


# --------------------------- parameter creation -----------------------------

class _KeyGen:
    def __init__(self, key):
        self._key = key
        self._i = 0

    def __call__(self):
        self._i += 1
        return jax.random.fold_in(self._key, self._i)


def _xavier(key, shape):
    limit = math.sqrt(6.0 / (shape[0] + shape[1]))
    return jax.random.uniform(key, shape, jnp.float32, -limit, limit)


def _attn_params(kg, D, n_heads):
    # Weights stored as bf16 (MXU operands); 1/sqrt(dk) folded into wq/bq.
    scale = 1.0 / math.sqrt(D // n_heads)
    wk = _xavier(kg(), (D, D))
    wv = _xavier(kg(), (D, D))
    return dict(
        wq=(_xavier(kg(), (D, D)) * scale).astype(_MXU_DTYPE),
        bq=jnp.zeros((1, D), jnp.float32),                 # scale-folded (zeros anyway)
        wkv=jnp.concatenate([wk, wv], axis=1).astype(_MXU_DTYPE),   # fused K|V weight
        bkv=jnp.zeros((1, 2 * D), jnp.float32),
        wo=_xavier(kg(), (D, D)).astype(_MXU_DTYPE),
        bo=jnp.zeros((1, D), jnp.float32),
    )


def init_params(key, src_vocab, tgt_vocab, d_model, n_heads, n_enc, n_dec, dim_mlp):
    kg = _KeyGen(key)
    D, F = d_model, dim_mlp
    params = dict(
        d_model=D, n_heads=n_heads, tgt_vocab=tgt_vocab,
        src_emb=_xavier(kg(), (src_vocab, D)),
        tgt_emb=_xavier(kg(), (tgt_vocab, D)),
        w_vocab=_xavier(kg(), (D, tgt_vocab)).astype(_MXU_DTYPE),
        enc_layers=[], dec_layers=[],
    )
    for _ in range(n_enc):
        params["enc_layers"].append(dict(
            attn=_attn_params(kg, D, n_heads),
            ln1_g=jnp.ones((1, D), jnp.float32), ln1_b=jnp.zeros((1, D), jnp.float32),
            w1=_xavier(kg(), (D, F)).astype(_MXU_DTYPE), b1=jnp.zeros((1, F), jnp.float32),
            w2=_xavier(kg(), (F, D)).astype(_MXU_DTYPE), b2=jnp.zeros((1, D), jnp.float32),
            ln2_g=jnp.ones((1, D), jnp.float32), ln2_b=jnp.zeros((1, D), jnp.float32),
        ))
    for _ in range(n_dec):
        params["dec_layers"].append(dict(
            self_attn=_attn_params(kg, D, n_heads),
            cross_attn=_attn_params(kg, D, n_heads),
            ln1_g=jnp.ones((1, D), jnp.float32), ln1_b=jnp.zeros((1, D), jnp.float32),
            ln2_g=jnp.ones((1, D), jnp.float32), ln2_b=jnp.zeros((1, D), jnp.float32),
            w1=_xavier(kg(), (D, F)).astype(_MXU_DTYPE), b1=jnp.zeros((1, F), jnp.float32),
            w2=_xavier(kg(), (F, D)).astype(_MXU_DTYPE), b2=jnp.zeros((1, D), jnp.float32),
            ln3_g=jnp.ones((1, D), jnp.float32), ln3_b=jnp.zeros((1, D), jnp.float32),
        ))
    return params


# --------------------------------- main -------------------------------------

if __name__ == "__main__":
    # small synthetic config
    SRC_VOCAB, TGT_VOCAB = 50, 64
    D_MODEL, N_HEADS, N_ENC, N_DEC, DIM_MLP = 32, 4, 2, 2, 64
    B, T_SRC, T_TGT = 2, 8, 8

    root = jax.random.PRNGKey(0)
    k_param, k_src, k_tgt = jax.random.split(root, 3)

    params = init_params(k_param, SRC_VOCAB, TGT_VOCAB,
                         D_MODEL, N_HEADS, N_ENC, N_DEC, DIM_MLP)

    src = jax.random.randint(k_src, (B, T_SRC), 0, SRC_VOCAB)
    tgt = jax.random.randint(k_tgt, (B, T_TGT), 0, TGT_VOCAB)
    # src_mask: True = token participates (last two tokens of sequence 1 are padding)
    src_mask = jnp.ones((B, T_SRC), dtype=bool).at[1, -2:].set(False)

    logits = transformer_forward(params, src, tgt, src_mask)
    logits = jax.block_until_ready(logits)

    assert logits.shape == (B, T_TGT, TGT_VOCAB), logits.shape
    assert bool(jnp.all(jnp.isfinite(logits)))
    print("KERNEL_OK")
</pallas_src>

<mosaic_0001>
module attributes {stable_mosaic.version = 11 : i64} {
  func.func @_mha_ln_kernel(%arg0: i32, %arg1: i32, %arg2: memref<1x8x32xf32, #tpu.memory_space<vmem>>, %arg3: memref<1x1x8xf32, #tpu.memory_space<vmem>>, %arg4: memref<32x32xbf16, #tpu.memory_space<vmem>>, %arg5: memref<1x32xf32, #tpu.memory_space<vmem>>, %arg6: memref<32x64xbf16, #tpu.memory_space<vmem>>, %arg7: memref<1x64xf32, #tpu.memory_space<vmem>>, %arg8: memref<32x32xbf16, #tpu.memory_space<vmem>>, %arg9: memref<1x32xf32, #tpu.memory_space<vmem>>, %arg10: memref<1x32xf32, #tpu.memory_space<vmem>>, %arg11: memref<1x32xf32, #tpu.memory_space<vmem>>, %arg12: memref<1x8x32xf32, #tpu.memory_space<vmem>>) attributes {dimension_semantics = [#tpu.dimension_semantics<parallel>, #tpu.dimension_semantics<parallel>], iteration_bounds = array<i64: 2, 1>, scalar_prefetch = 0 : i64, scratch_operands = 0 : i64, tpu.core_type = #tpu.core_type<tc>, window_params = [{transform_indices = @transform_0, window_bounds = array<i64: 1, 8, 32>}, {transform_indices = @transform_1, window_bounds = array<i64: 1, 1, 8>}, {pipeline_mode = #tpu.pipeline_mode<synchronous>, transform_indices = @transform_2, window_bounds = array<i64: 32, 32>}, {pipeline_mode = #tpu.pipeline_mode<synchronous>, transform_indices = @transform_3, window_bounds = array<i64: 1, 32>}, {pipeline_mode = #tpu.pipeline_mode<synchronous>, transform_indices = @transform_4, window_bounds = array<i64: 32, 64>}, {pipeline_mode = #tpu.pipeline_mode<synchronous>, transform_indices = @transform_5, window_bounds = array<i64: 1, 64>}, {pipeline_mode = #tpu.pipeline_mode<synchronous>, transform_indices = @transform_6, window_bounds = array<i64: 32, 32>}, {pipeline_mode = #tpu.pipeline_mode<synchronous>, transform_indices = @transform_7, window_bounds = array<i64: 1, 32>}, {pipeline_mode = #tpu.pipeline_mode<synchronous>, transform_indices = @transform_8, window_bounds = array<i64: 1, 32>}, {pipeline_mode = #tpu.pipeline_mode<synchronous>, transform_indices = @transform_9, window_bounds = array<i64: 1, 32>}, {transform_indices = @transform_10, window_bounds = array<i64: 1, 8, 32>}]} {
    %c0 = arith.constant 0 : index
    %c0_0 = arith.constant 0 : index
    %c0_1 = arith.constant 0 : index
    %0 = vector.load %arg2[%c0, %c0_0, %c0_1] : memref<1x8x32xf32, #tpu.memory_space<vmem>>, vector<1x8x32xf32>
    %1 = vector.shape_cast %0 : vector<1x8x32xf32> to vector<8x32xf32>
    %c0_2 = arith.constant 0 : index
    %c0_3 = arith.constant 0 : index
    %c0_4 = arith.constant 0 : index
    %2 = vector.load %arg2[%c0_2, %c0_3, %c0_4] : memref<1x8x32xf32, #tpu.memory_space<vmem>>, vector<1x8x32xf32>
    %3 = vector.shape_cast %2 : vector<1x8x32xf32> to vector<8x32xf32>
    %c0_5 = arith.constant 0 : index
    %c0_6 = arith.constant 0 : index
    %c0_7 = arith.constant 0 : index
    %4 = vector.load %arg3[%c0_5, %c0_6, %c0_7] : memref<1x1x8xf32, #tpu.memory_space<vmem>>, vector<1x1x8xf32>
    %5 = vector.shape_cast %4 : vector<1x1x8xf32> to vector<1x8xf32>
    %6 = arith.truncf %1 : vector<8x32xf32> to vector<8x32xbf16>
    %c0_8 = arith.constant 0 : index
    %c0_9 = arith.constant 0 : index
    %7 = vector.load %arg4[%c0_8, %c0_9] : memref<32x32xbf16, #tpu.memory_space<vmem>>, vector<32x32xbf16>
    %cst = arith.constant dense<0.000000e+00> : vector<8x32xf32>
    %8 = tpu.matmul %6, %7, %cst {dimension_numbers = #tpu.dot_dimension_numbers<[1], [0], [0], [1], [0, 0, 1, 1], [], []>} : vector<8x32xbf16>, vector<32x32xbf16>, vector<8x32xf32> -> vector<8x32xf32>
    %c0_10 = arith.constant 0 : index
    %c0_11 = arith.constant 0 : index
    %9 = vector.load %arg5[%c0_10, %c0_11] : memref<1x32xf32, #tpu.memory_space<vmem>>, vector<1x32xf32>
    %10 = vector.broadcast %9 : vector<1x32xf32> to vector<8x32xf32>
    %11 = arith.addf %8, %10 : vector<8x32xf32>
    %12 = arith.truncf %3 : vector<8x32xf32> to vector<8x32xbf16>
    %c0_12 = arith.constant 0 : index
    %c0_13 = arith.constant 0 : index
    %13 = vector.load %arg6[%c0_12, %c0_13] : memref<32x64xbf16, #tpu.memory_space<vmem>>, vector<32x64xbf16>
    %cst_14 = arith.constant dense<0.000000e+00> : vector<8x64xf32>
    %14 = tpu.matmul %12, %13, %cst_14 {dimension_numbers = #tpu.dot_dimension_numbers<[1], [0], [0], [1], [0, 0, 1, 1], [], []>} : vector<8x32xbf16>, vector<32x64xbf16>, vector<8x64xf32> -> vector<8x64xf32>
    %c0_15 = arith.constant 0 : index
    %c0_16 = arith.constant 0 : index
    %15 = vector.load %arg7[%c0_15, %c0_16] : memref<1x64xf32, #tpu.memory_space<vmem>>, vector<1x64xf32>
    %16 = vector.broadcast %15 : vector<1x64xf32> to vector<8x64xf32>
    %17 = arith.addf %14, %16 : vector<8x64xf32>
    %18 = vector.extract_strided_slice %11 {offsets = [0, 0], sizes = [8, 8], strides = [1, 1]} : vector<8x32xf32> to vector<8x8xf32>
    %19 = vector.extract_strided_slice %17 {offsets = [0, 0], sizes = [8, 8], strides = [1, 1]} : vector<8x64xf32> to vector<8x8xf32>
    %20 = vector.extract_strided_slice %17 {offsets = [0, 32], sizes = [8, 8], strides = [1, 1]} : vector<8x64xf32> to vector<8x8xf32>
    %21 = arith.truncf %18 : vector<8x8xf32> to vector<8x8xbf16>
    %22 = arith.truncf %19 : vector<8x8xf32> to vector<8x8xbf16>
    %cst_17 = arith.constant dense<0.000000e+00> : vector<8x8xf32>
    %23 = tpu.matmul %21, %22, %cst_17 {dimension_numbers = #tpu.dot_dimension_numbers<[1], [1], [0], [0], [0, 0, 1, 0], [], []>} : vector<8x8xbf16>, vector<8x8xbf16>, vector<8x8xf32> -> vector<8x8xf32>
    %24 = vector.broadcast %5 : vector<1x8xf32> to vector<8x8xf32>
    %25 = arith.addf %23, %24 : vector<8x8xf32>
    %cst_18 = arith.constant dense<0xFF800000> : vector<8xf32>
    %26 = vector.multi_reduction <maximumf>, %25, %cst_18 [1] : vector<8x8xf32> to vector<8xf32>
    %27 = vector.shape_cast %26 : vector<8xf32> to vector<8x1xf32>
    %28 = vector.broadcast %27 : vector<8x1xf32> to vector<8x8xf32>
    %29 = arith.subf %25, %28 : vector<8x8xf32>
    %30 = math.exp %29 : vector<8x8xf32>
    %cst_19 = arith.constant dense<0.000000e+00> : vector<8xf32>
    %31 = vector.multi_reduction <add>, %30, %cst_19 [1] : vector<8x8xf32> to vector<8xf32>
    %32 = vector.shape_cast %31 : vector<8xf32> to vector<8x1xf32>
    %33 = tpu.reciprocal %32 {approx = true} : vector<8x1xf32> -> vector<8x1xf32>
    %34 = vector.broadcast %33 : vector<8x1xf32> to vector<8x8xf32>
    %35 = arith.mulf %30, %34 : vector<8x8xf32>
    %36 = arith.truncf %35 : vector<8x8xf32> to vector<8x8xbf16>
    %37 = arith.truncf %20 : vector<8x8xf32> to vector<8x8xbf16>
    %cst_20 = arith.constant dense<0.000000e+00> : vector<8x8xf32>
    %38 = tpu.matmul %36, %37, %cst_20 {dimension_numbers = #tpu.dot_dimension_numbers<[1], [0], [0], [1], [0, 0, 1, 1], [], []>} : vector<8x8xbf16>, vector<8x8xbf16>, vector<8x8xf32> -> vector<8x8xf32>
    %39 = vector.extract_strided_slice %11 {offsets = [0, 8], sizes = [8, 8], strides = [1, 1]} : vector<8x32xf32> to vector<8x8xf32>
    %40 = vector.extract_strided_slice %17 {offsets = [0, 8], sizes = [8, 8], strides = [1, 1]} : vector<8x64xf32> to vector<8x8xf32>
    %41 = vector.extract_strided_slice %17 {offsets = [0, 40], sizes = [8, 8], strides = [1, 1]} : vector<8x64xf32> to vector<8x8xf32>
    %42 = arith.truncf %39 : vector<8x8xf32> to vector<8x8xbf16>
    %43 = arith.truncf %40 : vector<8x8xf32> to vector<8x8xbf16>
    %cst_21 = arith.constant dense<0.000000e+00> : vector<8x8xf32>
    %44 = tpu.matmul %42, %43, %cst_21 {dimension_numbers = #tpu.dot_dimension_numbers<[1], [1], [0], [0], [0, 0, 1, 0], [], []>} : vector<8x8xbf16>, vector<8x8xbf16>, vector<8x8xf32> -> vector<8x8xf32>
    %45 = vector.broadcast %5 : vector<1x8xf32> to vector<8x8xf32>
    %46 = arith.addf %44, %45 : vector<8x8xf32>
    %cst_22 = arith.constant dense<0xFF800000> : vector<8xf32>
    %47 = vector.multi_reduction <maximumf>, %46, %cst_22 [1] : vector<8x8xf32> to vector<8xf32>
    %48 = vector.shape_cast %47 : vector<8xf32> to vector<8x1xf32>
    %49 = vector.broadcast %48 : vector<8x1xf32> to vector<8x8xf32>
    %50 = arith.subf %46, %49 : vector<8x8xf32>
    %51 = math.exp %50 : vector<8x8xf32>
    %cst_23 = arith.constant dense<0.000000e+00> : vector<8xf32>
    %52 = vector.multi_reduction <add>, %51, %cst_23 [1] : vector<8x8xf32> to vector<8xf32>
    %53 = vector.shape_cast %52 : vector<8xf32> to vector<8x1xf32>
    %54 = tpu.reciprocal %53 {approx = true} : vector<8x1xf32> -> vector<8x1xf32>
    %55 = vector.broadcast %54 : vector<8x1xf32> to vector<8x8xf32>
    %56 = arith.mulf %51, %55 : vector<8x8xf32>
    %57 = arith.truncf %56 : vector<8x8xf32> to vector<8x8xbf16>
    %58 = arith.truncf %41 : vector<8x8xf32> to vector<8x8xbf16>
    %cst_24 = arith.constant dense<0.000000e+00> : vector<8x8xf32>
    %59 = tpu.matmul %57, %58, %cst_24 {dimension_numbers = #tpu.dot_dimension_numbers<[1], [0], [0], [1], [0, 0, 1, 1], [], []>} : vector<8x8xbf16>, vector<8x8xbf16>, vector<8x8xf32> -> vector<8x8xf32>
    %60 = vector.extract_strided_slice %11 {offsets = [0, 16], sizes = [8, 8], strides = [1, 1]} : vector<8x32xf32> to vector<8x8xf32>
    %61 = vector.extract_strided_slice %17 {offsets = [0, 16], sizes = [8, 8], strides = [1, 1]} : vector<8x64xf32> to vector<8x8xf32>
    %62 = vector.extract_strided_slice %17 {offsets = [0, 48], sizes = [8, 8], strides = [1, 1]} : vector<8x64xf32> to vector<8x8xf32>
    %63 = arith.truncf %60 : vector<8x8xf32> to vector<8x8xbf16>
    %64 = arith.truncf %61 : vector<8x8xf32> to vector<8x8xbf16>
    %cst_25 = arith.constant dense<0.000000e+00> : vector<8x8xf32>
    %65 = tpu.matmul %63, %64, %cst_25 {dimension_numbers = #tpu.dot_dimension_numbers<[1], [1], [0], [0], [0, 0, 1, 0], [], []>} : vector<8x8xbf16>, vector<8x8xbf16>, vector<8x8xf32> -> vector<8x8xf32>
    %66 = vector.broadcast %5 : vector<1x8xf32> to vector<8x8xf32>
    %67 = arith.addf %65, %66 : vector<8x8xf32>
    %cst_26 = arith.constant dense<0xFF800000> : vector<8xf32>
    %68 = vector.multi_reduction <maximumf>, %67, %cst_26 [1] : vector<8x8xf32> to vector<8xf32>
    %69 = vector.shape_cast %68 : vector<8xf32> to vector<8x1xf32>
    %70 = vector.broadcast %69 : vector<8x1xf32> to vector<8x8xf32>
    %71 = arith.subf %67, %70 : vector<8x8xf32>
    %72 = math.exp %71 : vector<8x8xf32>
    %cst_27 = arith.constant dense<0.000000e+00> : vector<8xf32>
    %73 = vector.multi_reduction <add>, %72, %cst_27 [1] : vector<8x8xf32> to vector<8xf32>
    %74 = vector.shape_cast %73 : vector<8xf32> to vector<8x1xf32>
    %75 = tpu.reciprocal %74 {approx = true} : vector<8x1xf32> -> vector<8x1xf32>
    %76 = vector.broadcast %75 : vector<8x1xf32> to vector<8x8xf32>
    %77 = arith.mulf %72, %76 : vector<8x8xf32>
    %78 = arith.truncf %77 : vector<8x8xf32> to vector<8x8xbf16>
    %79 = arith.truncf %62 : vector<8x8xf32> to vector<8x8xbf16>
    %cst_28 = arith.constant dense<0.000000e+00> : vector<8x8xf32>
    %80 = tpu.matmul %78, %79, %cst_28 {dimension_numbers = #tpu.dot_dimension_numbers<[1], [0], [0], [1], [0, 0, 1, 1], [], []>} : vector<8x8xbf16>, vector<8x8xbf16>, vector<8x8xf32> -> vector<8x8xf32>
    %81 = vector.extract_strided_slice %11 {offsets = [0, 24], sizes = [8, 8], strides = [1, 1]} : vector<8x32xf32> to vector<8x8xf32>
    %82 = vector.extract_strided_slice %17 {offsets = [0, 24], sizes = [8, 8], strides = [1, 1]} : vector<8x64xf32> to vector<8x8xf32>
    %83 = vector.extract_strided_slice %17 {offsets = [0, 56], sizes = [8, 8], strides = [1, 1]} : vector<8x64xf32> to vector<8x8xf32>
    %84 = arith.truncf %81 : vector<8x8xf32> to vector<8x8xbf16>
    %85 = arith.truncf %82 : vector<8x8xf32> to vector<8x8xbf16>
    %cst_29 = arith.constant dense<0.000000e+00> : vector<8x8xf32>
    %86 = tpu.matmul %84, %85, %cst_29 {dimension_numbers = #tpu.dot_dimension_numbers<[1], [1], [0], [0], [0, 0, 1, 0], [], []>} : vector<8x8xbf16>, vector<8x8xbf16>, vector<8x8xf32> -> vector<8x8xf32>
    %87 = vector.broadcast %5 : vector<1x8xf32> to vector<8x8xf32>
    %88 = arith.addf %86, %87 : vector<8x8xf32>
    %cst_30 = arith.constant dense<0xFF800000> : vector<8xf32>
    %89 = vector.multi_reduction <maximumf>, %88, %cst_30 [1] : vector<8x8xf32> to vector<8xf32>
    %90 = vector.shape_cast %89 : vector<8xf32> to vector<8x1xf32>
    %91 = vector.broadcast %90 : vector<8x1xf32> to vector<8x8xf32>
    %92 = arith.subf %88, %91 : vector<8x8xf32>
    %93 = math.exp %92 : vector<8x8xf32>
    %cst_31 = arith.constant dense<0.000000e+00> : vector<8xf32>
    %94 = vector.multi_reduction <add>, %93, %cst_31 [1] : vector<8x8xf32> to vector<8xf32>
    %95 = vector.shape_cast %94 : vector<8xf32> to vector<8x1xf32>
    %96 = tpu.reciprocal %95 {approx = true} : vector<8x1xf32> -> vector<8x1xf32>
    %97 = vector.broadcast %96 : vector<8x1xf32> to vector<8x8xf32>
    %98 = arith.mulf %93, %97 : vector<8x8xf32>
    %99 = arith.truncf %98 : vector<8x8xf32> to vector<8x8xbf16>
    %100 = arith.truncf %83 : vector<8x8xf32> to vector<8x8xbf16>
    %cst_32 = arith.constant dense<0.000000e+00> : vector<8x8xf32>
    %101 = tpu.matmul %99, %100, %cst_32 {dimension_numbers = #tpu.dot_dimension_numbers<[1], [0], [0], [1], [0, 0, 1, 1], [], []>} : vector<8x8xbf16>, vector<8x8xbf16>, vector<8x8xf32> -> vector<8x8xf32>
    %102 = tpu.concatenate %38, %59, %80, %101 in 1 : vector<8x8xf32>, vector<8x8xf32>, vector<8x8xf32>, vector<8x8xf32> -> vector<8x32xf32>
    %103 = arith.truncf %102 : vector<8x32xf32> to vector<8x32xbf16>
    %c0_33 = arith.constant 0 : index
    %c0_34 = arith.constant 0 : index
    %104 = vector.load %arg8[%c0_33, %c0_34] : memref<32x32xbf16, #tpu.memory_space<vmem>>, vector<32x32xbf16>
    %cst_35 = arith.constant dense<0.000000e+00> : vector<8x32xf32>
    %105 = tpu.matmul %103, %104, %cst_35 {dimension_numbers = #tpu.dot_dimension_numbers<[1], [0], [0], [1], [0, 0, 1, 1], [], []>} : vector<8x32xbf16>, vector<32x32xbf16>, vector<8x32xf32> -> vector<8x32xf32>
    %106 = arith.addf %1, %105 : vector<8x32xf32>
    %c0_36 = arith.constant 0 : index
    %c0_37 = arith.constant 0 : index
    %107 = vector.load %arg9[%c0_36, %c0_37] : memref<1x32xf32, #tpu.memory_space<vmem>>, vector<1x32xf32>
    %108 = vector.broadcast %107 : vector<1x32xf32> to vector<8x32xf32>
    %109 = arith.addf %106, %108 : vector<8x32xf32>
    %cst_38 = arith.constant dense<0.000000e+00> : vector<8xf32>
    %110 = vector.multi_reduction <add>, %109, %cst_38 [1] : vector<8x32xf32> to vector<8xf32>
    %111 = vector.shape_cast %110 : vector<8xf32> to vector<8x1xf32>
    %cst_39 = arith.constant 3.200000e+01 : f32
    %112 = vector.broadcast %cst_39 : f32 to vector<8x1xf32>
    %113 = arith.divf %111, %112 : vector<8x1xf32>
    %114 = vector.broadcast %113 : vector<8x1xf32> to vector<8x32xf32>
    %115 = arith.subf %109, %114 : vector<8x32xf32>
    %116 = arith.mulf %115, %115 : vector<8x32xf32>
    %cst_40 = arith.constant dense<0.000000e+00> : vector<8xf32>
    %117 = vector.multi_reduction <add>, %116, %cst_40 [1] : vector<8x32xf32> to vector<8xf32>
    %118 = vector.shape_cast %117 : vector<8xf32> to vector<8x1xf32>
    %cst_41 = arith.constant 3.200000e+01 : f32
    %119 = vector.broadcast %cst_41 : f32 to vector<8x1xf32>
    %120 = arith.divf %118, %119 : vector<8x1xf32>
    %121 = vector.broadcast %113 : vector<8x1xf32> to vector<8x32xf32>
    %122 = arith.subf %109, %121 : vector<8x32xf32>
    %cst_42 = arith.constant 9.99999974E-6 : f32
    %123 = vector.broadcast %cst_42 : f32 to vector<8x1xf32>
    %124 = arith.addf %120, %123 : vector<8x1xf32>
    %125 = math.rsqrt %124 : vector<8x1xf32>
    %126 = vector.broadcast %125 : vector<8x1xf32> to vector<8x32xf32>
    %127 = arith.mulf %122, %126 : vector<8x32xf32>
    %c0_43 = arith.constant 0 : index
    %c0_44 = arith.constant 0 : index
    %128 = vector.load %arg10[%c0_43, %c0_44] : memref<1x32xf32, #tpu.memory_space<vmem>>, vector<1x32xf32>
    %129 = vector.broadcast %128 : vector<1x32xf32> to vector<8x32xf32>
    %130 = arith.mulf %127, %129 : vector<8x32xf32>
    %c0_45 = arith.constant 0 : index
    %c0_46 = arith.constant 0 : index
    %131 = vector.load %arg11[%c0_45, %c0_46] : memref<1x32xf32, #tpu.memory_space<vmem>>, vector<1x32xf32>
    %132 = vector.broadcast %131 : vector<1x32xf32> to vector<8x32xf32>
    %133 = arith.addf %130, %132 : vector<8x32xf32>
    %c0_47 = arith.constant 0 : index
    %c0_48 = arith.constant 0 : index
    %c0_49 = arith.constant 0 : index
    %134 = vector.load %arg12[%c0_47, %c0_48, %c0_49] : memref<1x8x32xf32, #tpu.memory_space<vmem>>, vector<1x8x32xf32>
    %135 = vector.shape_cast %134 : vector<1x8x32xf32> to vector<8x32xf32>
    %136 = vector.shape_cast %133 : vector<8x32xf32> to vector<1x8x32xf32>
    tpu.vector_store %arg12[%c0_47, %c0_48, %c0_49], %136 {strides = array<i32>} : memref<1x8x32xf32, #tpu.memory_space<vmem>>, vector<1x8x32xf32>,
    return
  }
  func.func @transform_0(%arg0: i32, %arg1: i32) -> (i32, i32, i32) {
    %c0_i32 = arith.constant 0 : i32
    %c0_i32_0 = arith.constant 0 : i32
    return %arg0, %arg1, %c0_i32 : i32, i32, i32
  }
  func.func @transform_1(%arg0: i32, %arg1: i32) -> (i32, i32, i32) {
    %c0_i32 = arith.constant 0 : i32
    %c0_i32_0 = arith.constant 0 : i32
    %c0_i32_1 = arith.constant 0 : i32
    return %arg0, %c0_i32, %c0_i32_0 : i32, i32, i32
  }
  func.func @transform_2(%arg0: i32, %arg1: i32) -> (i32, i32) {
    %c0_i32 = arith.constant 0 : i32
    %c0_i32_0 = arith.constant 0 : i32
    %c0_i32_1 = arith.constant 0 : i32
    return %c0_i32, %c0_i32_0 : i32, i32
  }
  func.func @transform_3(%arg0: i32, %arg1: i32) -> (i32, i32) {
    %c0_i32 = arith.constant 0 : i32
    %c0_i32_0 = arith.constant 0 : i32
    %c0_i32_1 = arith.constant 0 : i32
    return %c0_i32, %c0_i32_0 : i32, i32
  }
  func.func @transform_4(%arg0: i32, %arg1: i32) -> (i32, i32) {
    %c0_i32 = arith.constant 0 : i32
    %c0_i32_0 = arith.constant 0 : i32
    %c0_i32_1 = arith.constant 0 : i32
    return %c0_i32, %c0_i32_0 : i32, i32
  }
  func.func @transform_5(%arg0: i32, %arg1: i32) -> (i32, i32) {
    %c0_i32 = arith.constant 0 : i32
    %c0_i32_0 = arith.constant 0 : i32
    %c0_i32_1 = arith.constant 0 : i32
    return %c0_i32, %c0_i32_0 : i32, i32
  }
  func.func @transform_6(%arg0: i32, %arg1: i32) -> (i32, i32) {
    %c0_i32 = arith.constant 0 : i32
    %c0_i32_0 = arith.constant 0 : i32
    %c0_i32_1 = arith.constant 0 : i32
    return %c0_i32, %c0_i32_0 : i32, i32
  }
  func.func @transform_7(%arg0: i32, %arg1: i32) -> (i32, i32) {
    %c0_i32 = arith.constant 0 : i32
    %c0_i32_0 = arith.constant 0 : i32
    %c0_i32_1 = arith.constant 0 : i32
    return %c0_i32, %c0_i32_0 : i32, i32
  }
  func.func @transform_8(%arg0: i32, %arg1: i32) -> (i32, i32) {
    %c0_i32 = arith.constant 0 : i32
    %c0_i32_0 = arith.constant 0 : i32
    %c0_i32_1 = arith.constant 0 : i32
    return %c0_i32, %c0_i32_0 : i32, i32
  }
  func.func @transform_9(%arg0: i32, %arg1: i32) -> (i32, i32) {
    %c0_i32 = arith.constant 0 : i32
    %c0_i32_0 = arith.constant 0 : i32
    %c0_i32_1 = arith.constant 0 : i32
    return %c0_i32, %c0_i32_0 : i32, i32
  }
  func.func @transform_10(%arg0: i32, %arg1: i32) -> (i32, i32, i32) {
    %c0_i32 = arith.constant 0 : i32
    %c0_i32_0 = arith.constant 0 : i32
    return %arg0, %arg1, %c0_i32 : i32, i32, i32
  }
}

</mosaic_0001>

<bundles_post_ra>
// kernel: tpu_custom_call.1
= control target key start
LH: loop header
LB: loop body
LE: loop exit
PB: predicated region body
PF: predicated region fallthrough
CT: control target
= control target key end

     0   :  { %s2124_s0 = inlined_call_operand.hbm [shape: f32[2,8,32], index: 0, kind: input, shape index: {}]   ;;  %s2125_s1 = inlined_call_operand.vmem [shape: f32[2,1,8], index: 1, kind: input, shape index: {}]   ;;  %s2126_s2 = inlined_call_operand.hbm [shape: bf16[32,32], index: 2, kind: input, shape index: {}]   ;;  %s2127_s3 = inlined_call_operand.vmem [shape: f32[1,32], index: 3, kind: input, shape index: {}]   ;;  %s2128_s4 = inlined_call_operand.hbm [shape: bf16[32,64], index: 4, kind: input, shape index: {}]   ;;  %s2129_s5 = inlined_call_operand.vmem [shape: f32[1,64], index: 5, kind: input, shape index: {}]   ;;  %s2130_s6 = inlined_call_operand.vmem [shape: bf16[32,32], index: 6, kind: input, shape index: {}]   ;;  %s2131_s7 = inlined_call_operand.vmem [shape: f32[1,32], index: 7, kind: input, shape index: {}]   ;;  %s2132_s8 = inlined_call_operand.vmem [shape: f32[1,32], index: 8, kind: input, shape index: {}]   ;;  %s2133_s9 = inlined_call_operand.vmem [shape: f32[1,32], index: 9, kind: input, shape index: {}]   ;;  %s2134_s10 = inlined_call_operand.hbm [shape: f32[2,8,32], index: 10, kind: output, shape index: {}]  }
   0x1   :  { %2142 = sst [smem:[#allocation14_spill]] %s2132_s8 }
   0x2   :  { %2143 = sst [smem:[#allocation15_spill]] %s2133_s9 }
   0x3   :  { %2144 = sst [smem:[#allocation16_spill]] %s2134_s10 }
   0x4   :  { %15 = vsyncpa [#allocation3], 0 }
   0x5   :  { %17 = vsyncpa [#allocation3 + $0x1], 0 }
   0x6   :  { %18 = vsyncpa [#allocation6], 0 }
   0x7   :  { %19 = vsyncpa [#allocation4], 0 }
   0x8   :  { %21 = vsyncpa [#allocation4 + $0x1], 0  ;;  %s1762_s13 = smov 0   ;;  %s1764_s14 = smov 0  }
   0x9   :  { %s1766_s15 = smov 0   ;;  %s1768_s16 = smov 0  }
   0xa   :  { %s1770_s17 = smov 0   ;;  %s1772_s18 = smov 0  }
   0xb LB: > { %2145 = sst [smem:[#allocation12_spill]] %s1667_s13  ;;  %s1257_s19 = sadd.s32 4294967295, %s1687_s18   ;;  %s1687_s18 = sphi %s1772_s18, %s27_s18   ;;  %s1683_s17 = sphi %s1770_s17, %s2169_s17   ;;  %s1679_s16 = sphi %s1768_s16, %s2168_s16   ;;  %s1675_s15 = sphi %s1766_s15, %s2167_s15   ;;  %s1671_s14 = sphi %s1764_s14, %s2166_s14   ;;  %s1667_s13 = sphi %s1762_s13, %s2165_s13  }
   0xc   : > { %s1258_s20 = sadd.s32 4294967294, %s1687_s18   ;;  %p61_p0 = scmp.ne.s32.totalorder %s1671_s14, %s1667_s13 }
   0xd   : > { %p1796_p1 = scmp.eq.s32.totalorder %s1257_s19, 0  ;;  %p1800_p2 = scmp.eq.s32.totalorder %s1257_s19, 1 }
   0xe   : > { %p287_p3 = scmp.eq.s32.totalorder %s1258_s20, 1  ;;  %p1259_p5 = scmp.ge.s32.totalorder %s1687_s18, 1 }
   0xf   : > { %s2146_s21 = scalar_select %p1796_p1, 1, 0 }
  0x10   : > { %p1806_p4 = por %p1796_p1, %p61_p0  ;;  %p1811_p6 = por %p287_p3, %p61_p0 }
  0x11   : > { %p294_p7 = scmp.lt.s32.totalorder %s1687_s18, 3  ;;  %s1689_s26 = smov [#allocation5]  }
  0x12   : > { %s2148_s23 = scalar_select %p1806_p4, 1, 0 }
  0x13   : > { %s2149_s24 = scalar_select %p1811_p6, 1, 0 }
  0x14   : > { %p1816_p8 = pnand %p1259_p5, %p294_p7  ;;  %s306_s27 = sshll.u32 %s1689_s26, 4  ;;  %s1820_s27 = int_to_ptr.vmem [resolvable:$true] %s306_s27 }
  0x15   : > { %2150 = sst [smem:[#allocation13_spill]] %s2149_s24  ;;  %s1690_s29 = smov [#allocation7]  }
  0x16   : > { %p1406_p9 = pneg %p1816_p8  ;;  %s322_s30 = sshll.u32 %s1690_s29, 4  ;;  %s1831_s30 = int_to_ptr.vmem [resolvable:$true] %s322_s30 }
  0x17   : > { %s1515_s19 = scalar_lea.hbm %s2126_s2, 256 }
  0x18   : > { %p1827_p11 = pnand %p1406_p9, %p1796_p1  ;;  %p1516_p12 = scmp.ne.s32.totalorder %s2126_s2, %s1515_s19 }
  0x19   : > { %p1522_p5 = scmp.lt.u32.totalorder %s1515_s19, %s2126_s2 }
  0x1a   : > { %p1517_p13 = pneg %p1827_p11 }
  0x1c   : > { %p1518_p0 = pnand %p1517_p13, %p1516_p12 }
  0x1e   : > { %p1519_p3 = pneg %p1518_p0 }
  0x20   : > { %p1524_p7 = pnand %p1522_p5, %p1519_p3 }
  0x22   : > { %1527 = shalt.err (!%p1524_p7)
}
  0x23   : > { %s1528_s29 = scalar_lea.vmem %s1820_s27, 256  ;;  %p1536_p1 = scmp.lt.s32.totalorder %s1820_s27, %s1820_s27 }
  0x24   : > { %p1529_p9 = scmp.ne.s32.totalorder %s1820_s27, %s1528_s29  ;;  %p1537_p12 = scmp.lt.s32.totalorder %s1528_s29, %s1528_s29 }
  0x26   : > { %p1531_p10 = pnand %p1529_p9, %p1517_p13  ;;  %p1538_p0 = por %p1537_p12, %p1536_p1 }
  0x28   : > { %p1532_p6 = pneg %p1531_p10 }
  0x2a   : > { %p1539_p4 = pnand %p1538_p0, %p1532_p6 }
  0x2c   : > { %1542 = shalt.err (!%p1539_p4)
}
  0x2d   : > { %s1691_s13 = smov 64   ;;  %s1692_s24 = smov 4  }
  0x2e   : > { %1409 = dma.hbm_to_vmem [thread:$0]  (!%p1827_p11), %s2126_s2, 256, %s1820_s27, [#allocation6], %s1691_s13, %s1691_s13, %s1692_s24  }
  0x2f   : > { %s1543_s26 = scalar_lea.hbm %s2128_s4, 256 }
  0x30   : > { %p1544_p1 = scmp.ne.s32.totalorder %s2128_s4, %s1543_s26  ;;  %p1550_p10 = scmp.lt.u32.totalorder %s1543_s26, %s2128_s4 }
  0x32   : > { %p1546_p4 = pnand %p1544_p1, %p1517_p13 }
  0x34   : > { %p1547_p6 = pneg %p1546_p4 }
  0x36   : > { %p1552_p3 = pnand %p1550_p10, %p1547_p6 }
  0x38   : > { %1555 = shalt.err (!%p1552_p3)
}
  0x39   : > { %s1556_s27 = scalar_lea.vmem %s1831_s30, 256  ;;  %p1564_p12 = scmp.lt.s32.totalorder %s1831_s30, %s1831_s30 }
  0x3a   : > { %p1557_p5 = scmp.ne.s32.totalorder %s1831_s30, %s1556_s27  ;;  %p1565_p0 = scmp.lt.s32.totalorder %s1556_s27, %s1556_s27 }
  0x3c   : > { %p1559_p7 = pnand %p1557_p5, %p1517_p13  ;;  %p1566_p1 = por %p1565_p0, %p1564_p12 }
  0x3e   : > { %p1560_p9 = pneg %p1559_p7 }
  0x40   : > { %p1567_p4 = pnand %p1566_p1, %p1560_p9 }
  0x42   : > { %1570 = shalt.err (!%p1567_p4)
}
  0x43   : > { %1412 = dma.hbm_to_vmem [thread:$0]  (!%p1827_p11), %s2128_s4, 256, %s1831_s30, [#allocation6], %s1691_s13, %s1691_s13, %s1692_s24  }
  0x44   : > { %s39_s10 = sadd.s32 1, %s1683_s17  ;;  %s48_s11 = sadd.s32 1, %s1675_s15 }
  0x45   : > { %p41_p13 = scmp.ge.s32.totalorder %s39_s10, 2  ;;  %p55_p6 = scmp.ne.s32.totalorder %s1675_s15, %s1671_s14 }
  0x46   : > { %p56_p10 = scmp.eq.s32.totalorder %s1687_s18, 0  ;;  %p1423_p3 = scmp.lt.s32.totalorder %s1687_s18, 2 }
  0x47   : > { %s2171_s10 = smov (%p41_p13, %s39_s10), 0  ;;  %p1895_p7 = por %p1800_p2, %p55_p6 }
  0x48   : > { %p57_p5 = por %p56_p10, %p55_p6  ;;  %s43_s12 = ssub.s32 %s1683_s17, %s2171_s10 }
  0x49   : > { %s2153_s28 = scalar_select %p1895_p7, 1, 0 }
  0x4a   : > { %s351_s19 = sand.u32 1, %s1675_s15   ;;  %p46_p9 = scmp.eq.s32.totalorder %s43_s12, 0 }
  0x4b   : > { %s1263_s30 = sshll.u32 %s351_s19, 3  ;;  %s1264_s13 = sshll.u32 %s1683_s17, 7 }
  0x4c   : > { %s1904_s24 = scalar_select %p46_p9, %s1675_s15, %s48_s11  }
  0x4d   : > { %s1909_s29 = scalar_lea.hbm %s2124_s0, %s1264_s13  ;;  %s355_s22 = scalar_lea.vmem [#allocation2], %s1263_s30 }
  0x4e   : > { %s363_s27 = sshll.u32 %s355_s22, 4  ;;  %p1913_p2 = pnand %p1423_p3, %p57_p5  ;;  %s1917_s27 = int_to_ptr.vmem [resolvable:$true] %s363_s27 }
  0x4f   : > { %s352_s9 = scalar_lea.sflag [#allocation3], %s351_s19  ;;  %s1571_s11 = scalar_lea.hbm %s1909_s29, 128 }
  0x50   : > { %p1572_p11 = scmp.ne.s32.totalorder %s1909_s29, %s1571_s11  ;;  %p1573_p12 = pneg %p1913_p2 }
  0x51   : > { %s1576_s13 = scalar_lea.hbm %s2124_s0, 256  ;;  %p1577_p4 = scmp.lt.u32.totalorder %s1909_s29, %s2124_s0 }
  0x52   : > { %p1574_p0 = pnand %p1573_p12, %p1572_p11  ;;  %p1578_p13 = scmp.lt.u32.totalorder %s1576_s13, %s1571_s11 }
  0x53   : > { %p1580_p10 = scmp.lt.u32.totalorder %s1571_s11, %s1909_s29 }
  0x54   : > { %p1575_p1 = pneg %p1574_p0  ;;  %p1579_p6 = por %p1578_p13, %p1577_p4 }
  0x56   : > { %p1581_p3 = por %p1580_p10, %p1579_p6 }
  0x58   : > { %p1582_p5 = pnand %p1581_p3, %p1575_p1 }
  0x5a   : > { %1585 = shalt.err (!%p1582_p5)
}
  0x5b   : > { %s1586_s19 = scalar_lea.vmem %s1917_s27, 128  ;;  %s1693_s22 = smov [#allocation2]  }
  0x5c   : > { %p1587_p9 = scmp.ne.s32.totalorder %s1917_s27, %s1586_s19  ;;  %s1591_s12 = sshll.u32 %s1693_s22, 4  ;;  %s1592_s12 = int_to_ptr.vmem [resolvable:$false] %s1591_s12 }
  0x5d   : > { %s1593_s30 = scalar_lea.vmem %s1592_s12, 256  ;;  %p1594_p7 = scmp.lt.s32.totalorder %s1917_s27, %s1592_s12 }
  0x5e   : > { %p1589_p11 = pnand %p1587_p9, %p1573_p12  ;;  %p1595_p4 = scmp.lt.s32.totalorder %s1593_s30, %s1586_s19 }
  0x60   : > { %p1590_p0 = pneg %p1589_p11  ;;  %p1596_p13 = por %p1595_p4, %p1594_p7 }
  0x62   : > { %p1597_p6 = pnand %p1596_p13, %p1590_p0 }
  0x64   : > { %1600 = shalt.err (!%p1597_p6)
}
  0x65   : > { %1416 = dma.hbm_to_vmem [thread:$0]  (!%p1913_p2), %s1909_s29, 128, %s1917_s27, %s352_s9  }
  0x66   : > { %378 = sbr.rel (%p1816_p8) target bundleno = 1890 (0x762), region = 60  ;;  %s1947_s11 = sand.u32 (!%p1816_p8), 1, %s1671_s14  }
  0x67   : > { %s1266_s13 = sshll.u32 (!%p1816_p8), %s1947_s11, 3  ;;  %s381_s20 = scalar_lea.sflag (!%p1816_p8), [#allocation3], %s1947_s11 }
  0x68   : > { %s384_s26 = scalar_lea.vmem (!%p1816_p8), [#allocation2], %s1266_s13  ;;  %p2155_p7 = scmp.ne.s32.totalorder (!%p1816_p8), %s2148_s23, 0 }
  0x6d   : > { %1654 = dma.done.wait (%p2155_p7), %s381_s20, 128  }
  0x6e   : > { %1656 = vsyncadd (%p2155_p7), %s381_s20, 4294967168  ;;  %p2156_p2 = scmp.ne.s32.totalorder %s2146_s21, 0 }
  0x70   : > { %1658 = dma.done.wait (%p2156_p2), [#allocation6], 512  }
  0x71   : > { %1660 = vsyncadd (%p2156_p2), [#allocation6], 4294966784  ;;  %v1694_v0 = vmov 0.0   ;;  %vm1695_vm0 = vmmov 0   ;;  %v1491_v1 = vld [vmem:[#allocation7] sm:$0xff]   ;;  %v1492_v2 = vld [vmem:[#allocation5] sm:$0xff]  }
  0x72   : > { %1330 = vmatprep.subr.bf16.mxu1 %v1694_v0  ;;  %1322 = vmatprep.subr.bf16.mxu0 %v1694_v0  ;;  %v1493_v3 = vld [vmem:[#allocation7 + $0x8] sm:$0xff]   ;;  %v1494_v5 = vld [vmem:[#allocation5 + $0x8] sm:$0xff]   ;;  %vm462_vm1 = vcmask 261120   ;;  %v1274_v7 = vld [vmem:[%s2129_s5] ss:$0 sm:$0xff]  ;;  %vm577_vm2 = vcmask 64512  }
  0x73   : > { %1334 = vmatprep.mubr.msk.bf16.mxu1 %vm1695_vm0, %v1694_v0  ;;  %1326 = vmatprep.mubr.msk.bf16.mxu0 %vm1695_vm0, %v1694_v0  ;;  %v1968_v4 = vld [vmem:[%s384_s26] sm:$0xff]  ;;  %s1696_s27 = smov 112   ;;  %s1697_s8 = smov 120   ;;  %vm642_vm3 = vcmask 1043456   ;;  %vm1030_vm4 = vcmask 130048   ;;  %vm1032_vm5 = vcmask 195584  }
  0x74   : > { %1331 = vmatpush3.bf16.msra.mxu1 %v1491_v1  ;;  %1323 = vmatpush3.bf16.msra.mxu0 %v1492_v2  ;;  %v438_v6 = vpack.c.bf16 %v1968_v4, %v1968_v4  ;;  %v1270_v8 = vld [vmem:[%s2127_s3] ss:$0 sm:$0xff]  ;;  %s1698_s9 = smov 104   ;;  %p432_p8 = scmp.lt.s32.totalorder %s1679_s16, 1 }
  0x75   : > { %1332 = vmatprep.subr.bf16.mxu1 %v1694_v0  ;;  %1324 = vmatprep.subr.bf16.mxu0 %v1694_v0  ;;  %s1699_s20 = smov 96   ;;  %s1700_s26 = smov 80  }
  0x76   : > { %s433_s19 = scalar_select %p432_p8, %s1679_s16, 1 }
  0x77   : > { %s1701_s21 = smov 72   ;;  %s1702_s23 = smov 88  }
  0x78   : > { %1333 = vmatpush3.bf16.msra.mxu1 %v1493_v3  ;;  %1325 = vmatpush3.bf16.msra.mxu0 %v1494_v5  ;;  %s434_s30 = scalar_lea.vmem %s2125_s1, %s433_s19  ;;  %s1704_s19 = smov 16  }
  0x79   : > { %1344 = vmatprep.subr.bf16.mxu1 %v1694_v0  ;;  %1338 = vmatprep.subr.bf16.mxu0 %v1694_v0  ;;  %v1278_v31 = vld [vmem:[%s434_s30] ss:$0 sm:$0xff]  ;;  %s1705_s22 = smov 24   ;;  %s2158_s29 = sld [smem:[#allocation15_spill]] }
  0x7a   : > { %s2159_s12 = sld [smem:[#allocation16_spill]]  ;;  %p2160_p1 = scmp.ne.s32.totalorder %s2153_s28, 0 }
  0x7b   : > { %1335 = vmatmul.mubr.msk.bf16.vlgmr.msra.gmra.mrb[0].mxu1 %vm462_vm1, %v438_v6  ;;  %1327 = vmatmul.mubr.msk.bf16.vlgmr.msra.gmra.mrb[0].mxu0 %vm462_vm1, %v438_v6 }
  0x7c   : > { %1346 = vmatprep.mubr.msk.bf16.mxu1 %vm1695_vm0, %v1694_v0  ;;  %1340 = vmatprep.mubr.msk.bf16.mxu0 %vm1695_vm0, %v1694_v0 }
 0x14e   : > { %v563_v9 = vpop.f32.mrb[0].mxu1  ;;  %v500_v12 = vpop.f32.mrb[0].mxu0 }
 0x14f   : > { %v564_v10 = vadd.f32 %v1274_v7, %v563_v9  ;;  %v1336_v11 = vpop.f32.mrb[1].mxu1  ;;  %v501_v14 = vadd.f32 %v1270_v8, %v500_v12  ;;  %v1328_v15 = vpop.f32.mrb[1].mxu0 }
 0x150   : > { %v566_v13 = vpop.f32.mrb[2].mxu1  ;;  %v503_v18 = vpop.f32.mrb[2].mxu0 }
 0x151   : > { %v1987_v16 = vpack.c.bf16 %v564_v10, %v564_v10  ;;  %v1337_v17 = vpop.f32.mrb[3].mxu1  ;;  %v1329_v19 = vpop.f32.mrb[3].mxu0  ;;  %v569_v20 = vpack.c.bf16 %v501_v14, %v501_v14 }
 0x153   : > { %799 = vrot.lane.b32.xlu1 %v1987_v16, %s1696_s27  ;;  %689 = vrot.lane.b32.xlu0 %v1987_v16, %s1697_s8  ;;  %v582_v21 = vsel %vm577_vm2, %v1987_v16, 0 }
 0x154   : > { %1339 = vmatpush3.bf16.xpose.msra.mxu0 %v582_v21 }
 0x155   : > { %1350 = vmatprep.subr.bf16.mxu0 %v1694_v0 }
 0x157   : > { %797 = vrot.lane.b32.xlu1 %v569_v20, %s1696_s27  ;;  %687 = vrot.lane.b32.xlu0 %v569_v20, %s1697_s8  ;;  %s1703_s27 = smov 8   ;;  %s431_s8 = scalar_lea.vmem [#allocation8], %s1266_s13 }
 0x15b   : > { %907 = vrot.lane.b32.xlu1 %v569_v20, %s1698_s9  ;;  %909 = vrot.lane.b32.xlu0 %v1987_v16, %s1698_s9  ;;  %s1149_s9 = sshll.u32 %s431_s8, 4  ;;  %s2076_s9 = int_to_ptr.vmem [resolvable:$true] %s1149_s9 }
 0x15c   : > { %1341 = vmatmul.mubr.msk.bf16.vlgmr.msra.gmra.mrb[4].mxu0 %vm577_vm2, %v569_v20 }
 0x15d   : > { %1352 = vmatprep.mubr.msk.bf16.mxu0 %vm1695_vm0, %v1694_v0 }
 0x1c5   : > { %v690_v22 = vpop.permute.xlu0 %689  ;;  %v800_v24 = vpop.permute.xlu1 %799 }
 0x1c6   : > { %v695_v23 = vsel %vm577_vm2, %v690_v22, 0  ;;  %v805_v26 = vsel %vm577_vm2, %v800_v24, 0 }
 0x1c7   : > { %1351 = vmatpush3.bf16.xpose.msra.mxu0 %v695_v23 }
 0x1c8   : > { %1362 = vmatprep.subr.bf16.mxu0 %v1694_v0 }
 0x1c9   : > { %v688_v25 = vpop.permute.xlu0 %687  ;;  %v798_v28 = vpop.permute.xlu1 %797 }
 0x1cd   : > { %v910_v27 = vpop.permute.xlu0 %909  ;;  %v908_v30 = vpop.permute.xlu1 %907 }
 0x1ce   : > { %1353 = vmatmul.mubr.msk.bf16.vlgmr.msra.gmra.mrb[8].mxu0 %vm577_vm2, %v688_v25  ;;  %v915_v29 = vsel %vm577_vm2, %v910_v27, 0 }
 0x1cf   : > { %1363 = vmatpush3.bf16.xpose.msra.mxu0 %v805_v26  ;;  %1364 = vmatprep.mubr.msk.bf16.mxu0 %vm1695_vm0, %v1694_v0 }
 0x1d0   : > { %1374 = vmatprep.subr.bf16.mxu0 %v1694_v0 }
 0x1d6   : > { %1365 = vmatmul.mubr.msk.bf16.vlgmr.msra.gmra.mrb[12].mxu0 %vm577_vm2, %v798_v28 }
 0x1d7   : > { %1375 = vmatpush3.bf16.xpose.msra.mxu0 %v915_v29  ;;  %1376 = vmatprep.mubr.msk.bf16.mxu0 %vm1695_vm0, %v1694_v0 }
 0x1d8   : > { %1386 = vmatprep.subr.bf16.mxu0 %v1694_v0 }
 0x1de   : > { %1377 = vmatmul.mubr.msk.bf16.vlgmr.msra.gmra.mrb[16].mxu0 %vm577_vm2, %v908_v30 }
 0x1df   : > { %1390 = vmatprep.mubr.msk.bf16.mxu0 %vm1695_vm0, %v1694_v0 }
 0x22f   : > { %v618_v32 = vpop.f32.mrb[4].mxu0 }
 0x230   : > { %v619_v33 = vadd.f32 %v1278_v31, %v618_v32  ;;  %v1342_v34 = vpop.f32.mrb[5].mxu0 }
 0x231   : > { %v621_v35 = vpop.f32.mrb[6].mxu0 }
 0x232   : > { %v1343_v36 = vpop.f32.mrb[7].mxu0  ;;  %v624_v37 = vsel %vm577_vm2, %v619_v33, -inf }
 0x233   : > { %625 = vmax.xlane.f32.xlu0 %v624_v37 }
 0x2a1   : > { %v731_v38 = vpop.f32.mrb[8].mxu0 }
 0x2a2   : > { %v732_v39 = vadd.f32 %v1278_v31, %v731_v38  ;;  %v1354_v40 = vpop.f32.mrb[9].mxu0 }
 0x2a3   : > { %v734_v41 = vpop.f32.mrb[10].mxu0 }
 0x2a4   : > { %v1355_v42 = vpop.f32.mrb[11].mxu0  ;;  %v737_v43 = vsel %vm577_vm2, %v732_v39, -inf }
 0x2a5   : > { %738 = vmax.xlane.f32.xlu1 %v737_v43  ;;  %v1495_v42 = vld [vmem:[%s2130_s6] sm:$0xff]  }
 0x2a6   : > { %1387 = vmatpush3.bf16.msra.mxu0 %v1495_v42 }
 0x2a7   : > { %1388 = vmatprep.subr.bf16.mxu0 %v1694_v0 }
 0x2a9   : > { %v841_v44 = vpop.f32.mrb[12].mxu0 }
 0x2aa   : > { %v842_v45 = vadd.f32 %v1278_v31, %v841_v44  ;;  %v1366_v46 = vpop.f32.mrb[13].mxu0 }
 0x2ab   : > { %v844_v47 = vpop.f32.mrb[14].mxu0 }
 0x2ac   : > { %v1367_v48 = vpop.f32.mrb[15].mxu0  ;;  %v847_v49 = vsel %vm577_vm2, %v842_v45, -inf  ;;  %v1496_v47 = vld [vmem:[%s2130_s6 + $0x8] sm:$0xff]  }
 0x2ad   : > { %848 = vmax.xlane.f32.xlu0 %v847_v49  ;;  %1389 = vmatpush3.bf16.msra.mxu0 %v1496_v47 }
 0x2b1   : > { %v951_v50 = vpop.f32.mrb[16].mxu0 }
 0x2b2   : > { %v952_v51 = vadd.f32 %v1278_v31, %v951_v50  ;;  %v1378_v52 = vpop.f32.mrb[17].mxu0 }
 0x2b3   : > { %v954_v53 = vpop.f32.mrb[18].mxu0 }
 0x2b4   : > { %v1379_v54 = vpop.f32.mrb[19].mxu0  ;;  %v957_v55 = vsel %vm577_vm2, %v952_v51, -inf }
 0x2b5   : > { %958 = vmax.xlane.f32.xlu0 %v957_v55 }
 0x2c0   : > { %v626_v56 = vpop.xlane.xlu0 %625 }
 0x2c1   : > { %v627_v57 = vsub.f32 %v619_v33, %v626_v56 }
 0x2c3   : > { %v628_v58 = vmul.f32 1.442695, %v627_v57 }
 0x2c5   : > { %1497 = vpow2.f32 %v628_v58 }
 0x2cf   : > { %v1498_v59 = vpop.eup %1497 }
 0x2d0   : > { %v630_v60 = vsel %vm577_vm2, %v1498_v59, 0.0 }
 0x2d1   : > { %631 = vadd.xlane.f32.xlu1 %v630_v60 }
 0x2e2   : > { %637 = vrot.lane.b32.xlu1 %v1987_v16, %s1699_s20  ;;  %s1135_s20 = scalar_lea.sflag [#allocation4], %s1947_s11 }
 0x332   : > { %v739_v61 = vpop.xlane.xlu1 %738 }
 0x333   : > { %v740_v62 = vsub.f32 %v732_v39, %v739_v61 }
 0x335   : > { %v741_v63 = vmul.f32 1.442695, %v740_v62 }
 0x337   : > { %1499 = vpow2.f32 %v741_v63  ;;  %v1290_v63 = vld [vmem:[%s2131_s7] ss:$0 sm:$0xff] }
 0x33a   : > { %v849_v1 = vpop.xlane.xlu0 %848 }
 0x33b   : > { %v850_v2 = vsub.f32 %v842_v45, %v849_v1 }
 0x33d   : > { %v851_v3 = vmul.f32 1.442695, %v850_v2 }
 0x33f   : > { %1501 = vpow2.f32 %v851_v3 }
 0x341   : > { %v1500_v5 = vpop.eup %1499 }
 0x342   : > { %v959_v6 = vpop.xlane.xlu0 %958  ;;  %v743_v7 = vsel %vm577_vm2, %v1500_v5, 0.0 }
 0x343   : > { %v960_v8 = vsub.f32 %v952_v51, %v959_v6  ;;  %744 = vadd.xlane.f32.xlu0 %v743_v7 }
 0x345   : > { %v961_v9 = vmul.f32 1.442695, %v960_v8 }
 0x347   : > { %1503 = vpow2.f32 %v961_v9 }
 0x349   : > { %v1502_v10 = vpop.eup %1501 }
 0x34a   : > { %v853_v11 = vsel %vm577_vm2, %v1502_v10, 0.0 }
 0x34b   : > { %854 = vadd.xlane.f32.xlu1 %v853_v11 }
 0x351   : > { %v1504_v12 = vpop.eup %1503 }
 0x352   : > { %v963_v13 = vsel %vm577_vm2, %v1504_v12, 0.0 }
 0x353   : > { %964 = vadd.xlane.f32.xlu0 %v963_v13 }
 0x35c   : > { %859 = vrot.lane.b32.xlu1 %v1987_v16, %s1700_s26  ;;  %s1601_s26 = scalar_lea.vmem %s2076_s9, 128 }
 0x35d   : > { %p1602_p12 = scmp.ne.s32.totalorder %s2076_s9, %s1601_s26 }
 0x35e   : > { %v632_v14 = vpop.xlane.xlu1 %631 }
 0x35f   : > { %1505 = vrcp.f32 %v632_v14  ;;  %p1603_p10 = pnand %p1602_p12, %p2160_p1 }
 0x360   : > { %969 = vrot.lane.b32.xlu1 %v1987_v16, %s1701_s21  ;;  %s2157_s21 = sld [smem:[#allocation14_spill]] }
 0x361   : > { %p1604_p3 = pneg %p1603_p10 }
 0x362   : > { %v638_v15 = vpop.permute.xlu1 %637 }
 0x363   : > { %v644_v17 = vsel %vm642_vm3, %v638_v15, 0 }
 0x364   : > { %1345 = vmatpush3.bf16.msra.mxu1 %v644_v17 }
 0x365   : > { %1356 = vmatprep.subr.bf16.mxu1 %v1694_v0 }
 0x366   : > { %v1291_v17 = vld [vmem:[%s2157_s21] ss:$0 sm:$0xff] }
 0x369   : > { %v1506_v18 = vpop.eup %1505  ;;  %749 = vrot.lane.b32.xlu0 %v1987_v16, %s1702_s23 }
 0x36a   : > { %v634_v19 = vmul.f32 %v1506_v18, %v1498_v59 }
 0x36c   : > { %v635_v20 = vpack.c.bf16 %v634_v19, %v634_v19  ;;  %v1292_v19 = vld [vmem:[%s2158_s29] ss:$0 sm:$0xff] }
 0x36e   : > { %1347 = vmatmul.mubr.msk.bf16.vlgmr.msra.gmra.mrb[4].mxu1 %vm577_vm2, %v635_v20 }
 0x36f   : > { %1358 = vmatprep.mubr.msk.bf16.mxu1 %vm1695_vm0, %v1694_v0 }
 0x3d0   : > { %v745_v21 = vpop.xlane.xlu0 %744 }
 0x3d1   : > { %1507 = vrcp.f32 %v745_v21 }
 0x3d8   : > { %v855_v22 = vpop.xlane.xlu1 %854 }
 0x3d9   : > { %1509 = vrcp.f32 %v855_v22 }
 0x3db   : > { %v1508_v23 = vpop.eup %1507 }
 0x3dc   : > { %v747_v25 = vmul.f32 %v1508_v23, %v1500_v5  ;;  %v860_v28 = vpop.permute.xlu1 %859 }
 0x3dd   : > { %v865_v30 = vsel %vm642_vm3, %v860_v28, 0 }
 0x3de   : > { %v748_v16 = vpack.c.bf16 %v747_v25, %v747_v25 }
 0x3e0   : > { %v965_v24 = vpop.xlane.xlu0 %964  ;;  %v970_v32 = vpop.permute.xlu1 %969 }
 0x3e1   : > { %1511 = vrcp.f32 %v965_v24  ;;  %v975_v35 = vsel %vm642_vm3, %v970_v32, 0 }
 0x3e3   : > { %v1510_v29 = vpop.eup %1509 }
 0x3e4   : > { %v750_v26 = vpop.permute.xlu0 %749  ;;  %v857_v31 = vmul.f32 %v1510_v29, %v1502_v10 }
 0x3e5   : > { %v755_v27 = vsel %vm642_vm3, %v750_v26, 0 }
 0x3e6   : > { %1357 = vmatpush3.bf16.msra.mxu1 %v755_v27  ;;  %v858_v33 = vpack.c.bf16 %v857_v31, %v857_v31 }
 0x3e7   : > { %1368 = vmatprep.subr.bf16.mxu1 %v1694_v0 }
 0x3e9   : > { %1359 = vmatmul.mubr.msk.bf16.vlgmr.msra.gmra.mrb[8].mxu1 %vm577_vm2, %v748_v16 }
 0x3ea   : > { %1369 = vmatpush3.bf16.msra.mxu1 %v865_v30  ;;  %1370 = vmatprep.mubr.msk.bf16.mxu1 %vm1695_vm0, %v1694_v0 }
 0x3eb   : > { %1380 = vmatprep.subr.bf16.mxu1 %v1694_v0  ;;  %v1512_v34 = vpop.eup %1511 }
 0x3ec   : > { %v967_v36 = vmul.f32 %v1512_v34, %v1504_v12 }
 0x3ee   : > { %v968_v37 = vpack.c.bf16 %v967_v36, %v967_v36 }
 0x3f1   : > { %1371 = vmatmul.mubr.msk.bf16.vlgmr.msra.gmra.mrb[12].mxu1 %vm577_vm2, %v858_v33 }
 0x3f2   : > { %1381 = vmatpush3.bf16.msra.mxu1 %v975_v35  ;;  %1382 = vmatprep.mubr.msk.bf16.mxu1 %vm1695_vm0, %v1694_v0 }
 0x3f9   : > { %1383 = vmatmul.mubr.msk.bf16.vlgmr.msra.gmra.mrb[16].mxu1 %vm577_vm2, %v968_v37 }
 0x441   : > { %v680_v38 = vpop.f32.mrb[4].mxu1 }
 0x442   : > { %v1348_v39 = vpop.f32.mrb[5].mxu1 }
 0x443   : > { %v683_v40 = vpop.f32.mrb[6].mxu1 }
 0x444   : > { %v1349_v41 = vpop.f32.mrb[7].mxu1 }
 0x4bc   : > { %v791_v43 = vpop.f32.mrb[8].mxu1 }
 0x4bd   : > { %1018 = vrot.lane.b32.xlu0 %v791_v43, %s1703_s27  ;;  %v1360_v44 = vpop.f32.mrb[9].mxu1  ;;  %s1294_s27 = sshll.u32 %s1679_s16, 7  ;;  %s1706_s16 = smov [#allocation8]  }
 0x4be   : > { %v794_v45 = vpop.f32.mrb[10].mxu1  ;;  %s2074_s30 = scalar_lea.hbm %s2159_s12, %s1294_s27  ;;  %s1605_s13 = sshll.u32 %s1706_s16, 4  ;;  %s1606_s13 = int_to_ptr.vmem [resolvable:$false] %s1605_s13 }
 0x4bf   : > { %v1361_v46 = vpop.f32.mrb[11].mxu1  ;;  %s1607_s21 = scalar_lea.vmem %s1606_s13, 256  ;;  %p1608_p5 = scmp.lt.s32.totalorder %s2076_s9, %s1606_s13 }
 0x4c0   : > { %p1609_p9 = scmp.lt.s32.totalorder %s1607_s21, %s1601_s26 }
 0x4c2   : > { %p1610_p11 = por %p1609_p9, %p1608_p5 }
 0x4c4   : > { %v901_v48 = vpop.f32.mrb[12].mxu1  ;;  %p1611_p0 = pnand %p1610_p11, %p1604_p3 }
 0x4c5   : > { %1022 = vrot.lane.b32.xlu1 %v901_v48, %s1704_s19  ;;  %v1372_v49 = vpop.f32.mrb[13].mxu1 }
 0x4c6   : > { %v904_v50 = vpop.f32.mrb[14].mxu1 }
 0x4c7   : > { %v1373_v51 = vpop.f32.mrb[15].mxu1 }
 0x4cc   : > { %v1011_v52 = vpop.f32.mrb[16].mxu1 }
 0x4cd   : > { %1026 = vrot.lane.b32.xlu0 %v1011_v52, %s1705_s22  ;;  %v1384_v0 = vpop.f32.mrb[17].mxu1 }
 0x4ce   : > { %v1014_v53 = vpop.f32.mrb[18].mxu1 }
 0x4cf   : > { %v1385_v54 = vpop.f32.mrb[19].mxu1 }
 0x52f   : > { %v1019_v55 = vpop.permute.xlu0 %1018 }
 0x530   : > { %v1029_v57 = vsel %vm577_vm2, %v680_v38, %v1019_v55 }
 0x537   : > { %v1023_v56 = vpop.permute.xlu1 %1022 }
 0x538   : > { %v1031_v58 = vsel %vm1030_vm4, %v1029_v57, %v1023_v56 }
 0x53f   : > { %v1027_v59 = vpop.permute.xlu0 %1026 }
 0x540   : > { %v1033_v60 = vsel %vm1032_vm5, %v1031_v58, %v1027_v59 }
 0x541   : > { %v1034_v61 = vpack.c.bf16 %v1033_v60, %v1033_v60 }
 0x543   : > { %1391 = vmatmul.mubr.msk.bf16.vlgmr.msra.gmra.mrb[20].mxu0 %vm462_vm1, %v1034_v61 }
 0x616   : > { %v1088_v62 = vpop.f32.mrb[20].mxu0 }
 0x617   : > { %v1094_v1 = vadd.f32 %v1088_v62, %v1968_v4  ;;  %v1392_v2 = vpop.f32.mrb[21].mxu0 }
 0x618   : > { %v1091_v3 = vpop.f32.mrb[22].mxu0 }
 0x619   : > { %v1393_v5 = vpop.f32.mrb[23].mxu0  ;;  %v1102_v6 = vadd.f32 %v1290_v63, %v1094_v1 }
 0x61b   : > { %v1103_v7 = vsel %vm462_vm1, %v1102_v6, 0.0 }
 0x61c   : > { %1104 = vadd.xlane.f32.xlu1 %v1103_v7 }
 0x6a9   : > { %v1105_v8 = vpop.xlane.xlu1 %1104 }
 0x6aa   : > { %v1107_v9 = vmul.f32 0.03125, %v1105_v8 }
 0x6ac   : > { %v1108_v10 = vsub.f32 %v1102_v6, %v1107_v9 }
 0x6ae   : > { %v1109_v11 = vmul.f32 %v1108_v10, %v1108_v10 }
 0x6b0   : > { %v1110_v12 = vsel %vm462_vm1, %v1109_v11, 0.0 }
 0x6b1   : > { %1111 = vadd.xlane.f32.xlu0 %v1110_v12 }
 0x73e   : > { %v1112_v13 = vpop.xlane.xlu0 %1111 }
 0x73f   : > { %v1113_v14 = vmul.f32 0.03125, %v1112_v13 }
 0x741   : > { %v1114_v4 = vadd.f32 1e-05, %v1113_v14 }
 0x743   : > { %1513 = vrsqrt.f32 %v1114_v4 }
 0x74d   : > { %v1514_v15 = vpop.eup %1513 }
 0x74e   : > { %v1116_v18 = vmul.f32 %v1514_v15, %v1108_v10 }
 0x750   : > { %v1124_v20 = vmul.f32 %v1291_v17, %v1116_v18 }
 0x752   : > { %v1132_v21 = vadd.f32 %v1292_v19, %v1124_v20 }
 0x754   : > { %1133 = vst.msk [vmem:[%s431_s8] sm:$0xff] %vm462_vm1, %v1132_v21 }
 0x755   : > { %1614 = shalt.err (!%p1611_p0)
}
 0x756   : > { %s1615_s11 = scalar_lea.hbm %s2074_s30, 128  ;;  %s1619_s29 = scalar_lea.hbm %s2159_s12, 256 }
 0x757   : > { %p1616_p4 = scmp.ne.s32.totalorder %s2074_s30, %s1615_s11  ;;  %p1620_p7 = scmp.lt.u32.totalorder %s2074_s30, %s2159_s12 }
 0x758   : > { %p1621_p2 = scmp.lt.u32.totalorder %s1619_s29, %s1615_s11  ;;  %p1623_p12 = scmp.lt.u32.totalorder %s1615_s11, %s2074_s30 }
 0x759   : > { %p1617_p13 = pnand %p1616_p4, %p2160_p1 }
 0x75a   : > { %p1622_p8 = por %p1621_p2, %p1620_p7 }
 0x75b   : > { %p1618_p6 = pneg %p1617_p13 }
 0x75c   : > { %p1624_p10 = por %p1623_p12, %p1622_p8 }
 0x75e   : > { %p1625_p3 = pnand %p1624_p10, %p1618_p6 }
 0x760   : > { %1628 = shalt.err (!%p1625_p3)
}
 0x761   : > { %1404 = dma.vmem_to_hbm [thread:$0]  (%p2160_p1), %s2076_s9, 128, %s2074_s30, %s1135_s20  }
 0x762 PF: > { %s2161_s19 = sld [smem:[#allocation12_spill]]  ;;  %s2162_s22 = sld [smem:[#allocation13_spill]] }
 0x763   : > { %p2164_p9 = scmp.ge.s32.totalorder %s1687_s18, 2 }
 0x768   : > { %s1161_s26 = sand.u32 1, %s2161_s19   ;;  %p2163_p5 = scmp.ne.s32.totalorder %s2162_s22, 0 }
 0x769   : > { %s1162_s16 = scalar_lea.sflag [#allocation4], %s1161_s26 }
 0x76a   : > { %p1418_p11 = pnand %p2164_p9, %p2163_p5 }
 0x76c   : > { %1662 = dma.done.wait (!%p1418_p11), %s1162_s16, 128  }
 0x76d   : > { %1664 = vsyncadd (!%p1418_p11), %s1162_s16, 4294967168  ;;  %s27_s18 = sadd.s32 1, %s1687_s18   ;;  %s2165_s13 = smov %s1671_s14 }
 0x76e   : > { %p24_p0 = scmp.ge.s32.totalorder %s27_s18, 4   ;;  %s2166_s14 = smov %s1675_s15 }
 0x76f   : > { %s2167_s15 = smov %s1904_s24  ;;  %s2168_s16 = smov %s1683_s17 }
 0x770   : > { %s2169_s17 = smov %s2171_s10  ;;  %26 = sbr.rel (!%p24_p0) target bundleno = 11 (0xb), region = 116 }
 0x777   :  { %1167 = vsyncpa [#allocation3], 1 }
 0x778   :  { %1169 = vsyncpa [#allocation3 + $0x1], 1 }
 0x779   :  { %1170 = vsyncpa [#allocation6], 1 }
 0x77a   :  { %1171 = vsyncpa [#allocation4], 1 }
 0x77b   :  { %1173 = vsyncpa [#allocation4 + $0x1], 1 }

</bundles_post_ra>
